<compile_context>
chip_gen: v6e
topology: v6e:2x2x1
jax: 0.10.0
libtpu: 0.0.40
codegen_flags: <defaults>
</compile_context>

<pallas_src>
import functools
import math

import jax
import jax.numpy as jnp
from jax.experimental import pallas as pl
from jax.experimental.pallas import tpu as pltpu

LANE = 128  # lane width everything is padded to


def acot_nn_kernel(x_ref, w_ref, noise_ref, out_ref, *, ni):
    """One batch tile of the actor MLP.

    x_ref:     [tile_b, ni]        input activations (ni = round_up(num_in, 8))
    w_ref:     [ni + 264, 128]     packed weights: w1 | w2 | w3 | biases
    noise_ref: [tile_b, 128]       uniform [0,1) noise (only first A lanes used)
    out_ref:   [tile_b, 256]       lanes [0:128)=model_out, [128:256)=policy
    """
    x = x_ref[...]

    # Static, 8/128-aligned slices of the resident packed-weight slab.
    w1 = w_ref[0:ni, :]                           # [ni, 128]
    w2 = w_ref[ni:ni + LANE, :]                   # [128, 128]
    w3 = w_ref[ni + LANE:ni + 2 * LANE, :]        # [128, 128]
    bias = w_ref[ni + 2 * LANE:ni + 2 * LANE + 8, :]
    b1 = bias[0:1, :]
    b2 = bias[1:2, :]
    b3 = bias[2:3, :]

    wdt = w1.dtype  # f32 by default; bf16 if requested (f32 accumulation kept)

    # Layer 1: Linear + LeakyReLU(0.01). Padded lanes stay exactly zero.
    h1 = jnp.dot(x.astype(wdt), w1, preferred_element_type=jnp.float32) + b1
    h1 = jnp.where(h1 > 0, h1, 0.01 * h1)

    # Layer 2: Linear + LeakyReLU(0.01).
    h2 = jnp.dot(h1.astype(wdt), w2, preferred_element_type=jnp.float32) + b2
    h2 = jnp.where(h2 > 0, h2, 0.01 * h2)

    # Output layer: Linear + tanh.
    m = jnp.tanh(
        jnp.dot(h2.astype(wdt), w3, preferred_element_type=jnp.float32) + b3)

    # policy = model_out + (2*U[0,1) - 1) * 0.1
    noise = noise_ref[...]
    policy = m + (2.0 * noise - 1.0) * 0.1

    # Single lane-dense, unmasked store of the fused [tile_b, 256] slab.
    out_ref[...] = jnp.concatenate([m, policy], axis=-1)


def _round_up(x, m):
    return (x + m - 1) // m * m


def pack_params(params, num_in, hidden, action_size, dtype=jnp.float32):
    """Pack w1,b1,w2,b2,w3,b3 into one [ni + 2*128 + 8, 128] slab (zero-padded)."""
    ni = _round_up(num_in, 8)
    w1 = jnp.zeros((ni, LANE), dtype).at[:num_in, :hidden].set(
        params["w1"].astype(dtype))
    w2 = jnp.zeros((LANE, LANE), dtype).at[:hidden, :hidden].set(
        params["w2"].astype(dtype))
    w3 = jnp.zeros((LANE, LANE), dtype).at[:hidden, :action_size].set(
        params["w3"].astype(dtype))
    b = jnp.zeros((8, LANE), dtype)
    b = b.at[0, :hidden].set(params["b1"].reshape(-1).astype(dtype))
    b = b.at[1, :hidden].set(params["b2"].reshape(-1).astype(dtype))
    b = b.at[2, :action_size].set(params["b3"].reshape(-1).astype(dtype))
    return jnp.concatenate([w1, w2, w3, b], axis=0)


def acot_nn_forward(x, params, key, *, tile_b=1024, weights_dtype=jnp.float32):
    """Full actor MLP forward in one Pallas call.

    x:      [B, num_inputs]  float32
    params: dict of w1[in,H], b1[1,H], w2[H,H], b2[1,H], w3[H,A], b3[1,A]
    key:    jax PRNG key for the exploration noise
    returns (model_out, policy), each [B, A] float32
    """
    B, num_in = x.shape
    H = params["w1"].shape[1]
    A = params["w3"].shape[1]
    ni = _round_up(num_in, 8)

    # Batch tiling: big tiles amortize the ~0.35us/step pipeline overhead;
    # for large batches keep >=2 grid steps so v7x megacore can split them.
    tile_b = max(8, min(tile_b, _round_up(max(B, 1), 8)))
    if _round_up(B, tile_b) // tile_b < 2 and tile_b >= 16:
        tile_b = _round_up(tile_b // 2, 8)
    b_pad = _round_up(B, tile_b)
    grid = (b_pad // tile_b,)

    # Pad activations to [b_pad, ni]; pack weights into one resident slab.
    x_p = jnp.zeros((b_pad, ni), jnp.float32).at[:B, :num_in].set(x)
    w_slab = pack_params(params, num_in, H, A, weights_dtype)
    # Uniform [0,1) exploration noise (== torch.rand_like statistically),
    # generated lane-dense so its DMA and use are unmasked.
    noise = jax.random.uniform(key, (b_pad, LANE), jnp.float32)

    kernel = functools.partial(acot_nn_kernel, ni=ni)
    slab_rows = ni + 2 * LANE + 8

    grid_spec = pltpu.PrefetchScalarGridSpec(
        num_scalar_prefetch=0,
        grid=grid,
        in_specs=[
            # Activations stream per batch tile.
            pl.BlockSpec((tile_b, ni), lambda i: (i, 0)),
            # Packed weights: same block every step -> resident in VMEM.
            pl.BlockSpec((slab_rows, LANE), lambda i: (0, 0)),
            # Noise streams per batch tile.
            pl.BlockSpec((tile_b, LANE), lambda i: (i, 0)),
        ],
        out_specs=pl.BlockSpec((tile_b, 2 * LANE), lambda i: (i, 0)),
    )

    wbytes = int(w_slab.size) * jnp.dtype(weights_dtype).itemsize
    cost = pl.CostEstimate(
        flops=2 * b_pad * (ni * LANE + LANE * LANE + LANE * LANE),
        transcendentals=b_pad * LANE,
        bytes_accessed=4 * (b_pad * ni + b_pad * LANE + b_pad * 2 * LANE) + wbytes,
    )

    fused = pl.pallas_call(
        kernel,
        out_shape=jax.ShapeDtypeStruct((b_pad, 2 * LANE), jnp.float32),
        grid_spec=grid_spec,
        compiler_params=pltpu.CompilerParams(
            dimension_semantics=("parallel",)),
        cost_estimate=cost,
    )(x_p, w_slab, noise)

    model_out = fused[:B, :A]
    policy = fused[:B, LANE:LANE + A]
    return model_out, policy


def xavier_uniform(key, fan_in, fan_out, gain):
    # PyTorch xavier_uniform_: U(-a, a), a = gain * sqrt(6 / (fan_in + fan_out))
    a = gain * math.sqrt(6.0 / (fan_in + fan_out))
    # Returned pre-transposed: [fan_in, fan_out].
    return jax.random.uniform(key, (fan_in, fan_out), jnp.float32, -a, a)


def linear_bias(key, fan_in, fan_out):
    # PyTorch Linear default bias init: U(-1/sqrt(fan_in), 1/sqrt(fan_in))
    bound = 1.0 / math.sqrt(fan_in)
    return jax.random.uniform(key, (1, fan_out), jnp.float32, -bound, bound)


def init_params(key, num_inputs, hidden, action_size):
    gain = math.sqrt(2.0 / (1.0 + 0.01 ** 2))  # calculate_gain('leaky_relu')
    k = jax.random.split(key, 6)
    return {
        "w1": xavier_uniform(k[0], num_inputs, hidden, gain),
        "b1": linear_bias(k[1], num_inputs, hidden),
        "w2": xavier_uniform(k[2], hidden, hidden, gain),
        "b2": linear_bias(k[3], hidden, hidden),
        "w3": xavier_uniform(k[4], hidden, action_size, gain),
        "b3": linear_bias(k[5], hidden, action_size),
    }


if __name__ == "__main__":
    # Small shapes consistent with the module's forward:
    #   num_inputs=16, args.num_units_openai=32, action_size=8, batch=4
    B, NUM_INPUTS, HIDDEN, ACTION_SIZE = 4, 16, 32, 8

    key = jax.random.PRNGKey(0)
    k_x, k_params, k_noise = jax.random.split(key, 3)

    x = jax.random.normal(k_x, (B, NUM_INPUTS), jnp.float32)
    params = init_params(k_params, NUM_INPUTS, HIDDEN, ACTION_SIZE)

    model_out, policy = acot_nn_forward(x, params, k_noise)
    jax.block_until_ready((model_out, policy))

    # Cross-check deterministic part against pure-JAX reference.
    def ref_model_out(x, p):
        lrelu = lambda v: jnp.where(v > 0, v, 0.01 * v)
        h1 = lrelu(x @ p["w1"] + p["b1"])
        h2 = lrelu(h1 @ p["w2"] + p["b2"])
        return jnp.tanh(h2 @ p["w3"] + p["b3"])

    ref_m = ref_model_out(x, params)
    assert model_out.shape == (B, ACTION_SIZE)
    assert policy.shape == (B, ACTION_SIZE)
    # Tolerance allows for MXU default-precision matmul passes on real TPUs.
    assert jnp.allclose(model_out, ref_m, atol=5e-3, rtol=5e-3)

    # policy = model_out + (2*U[0,1) - 1) * 0.1  =>  delta in [-0.1, 0.1)
    delta = policy - model_out
    assert bool(jnp.all(delta >= -0.1 - 1e-6)) and bool(jnp.all(delta < 0.1 + 1e-6))

    print("KERNEL_OK")
</pallas_src>

<mosaic_0001>
module attributes {stable_mosaic.version = 11 : i64} {
  func.func @acot_nn_kernel(%arg0: i32, %arg1: memref<8x16xf32, #tpu.memory_space<vmem>>, %arg2: memref<280x128xf32, #tpu.memory_space<vmem>>, %arg3: memref<8x128xf32, #tpu.memory_space<vmem>>, %arg4: memref<8x256xf32, #tpu.memory_space<vmem>>) attributes {dimension_semantics = [#tpu.dimension_semantics<parallel>], iteration_bounds = array<i64: 1>, scalar_prefetch = 0 : i64, scratch_operands = 0 : i64, tpu.core_type = #tpu.core_type<tc>, window_params = [{transform_indices = @transform_0, window_bounds = array<i64: 8, 16>}, {pipeline_mode = #tpu.pipeline_mode<synchronous>, transform_indices = @transform_1, window_bounds = array<i64: 280, 128>}, {transform_indices = @transform_2, window_bounds = array<i64: 8, 128>}, {transform_indices = @transform_3, window_bounds = array<i64: 8, 256>}]} {
    %c0 = arith.constant 0 : index
    %c0_0 = arith.constant 0 : index
    %0 = vector.load %arg1[%c0, %c0_0] : memref<8x16xf32, #tpu.memory_space<vmem>>, vector<8x16xf32>
    %c0_1 = arith.constant 0 : index
    %c0_2 = arith.constant 0 : index
    %1 = vector.load %arg2[%c0_1, %c0_2] : memref<280x128xf32, #tpu.memory_space<vmem>>, vector<16x128xf32>
    %c16 = arith.constant 16 : index
    %c0_3 = arith.constant 0 : index
    %2 = vector.load %arg2[%c16, %c0_3] : memref<280x128xf32, #tpu.memory_space<vmem>>, vector<128x128xf32>
    %c144 = arith.constant 144 : index
    %c0_4 = arith.constant 0 : index
    %3 = vector.load %arg2[%c144, %c0_4] : memref<280x128xf32, #tpu.memory_space<vmem>>, vector<128x128xf32>
    %c272 = arith.constant 272 : index
    %c0_5 = arith.constant 0 : index
    %4 = vector.load %arg2[%c272, %c0_5] : memref<280x128xf32, #tpu.memory_space<vmem>>, vector<8x128xf32>
    %5 = vector.extract_strided_slice %4 {offsets = [0, 0], sizes = [1, 128], strides = [1, 1]} : vector<8x128xf32> to vector<1x128xf32>
    %6 = vector.extract_strided_slice %4 {offsets = [1, 0], sizes = [1, 128], strides = [1, 1]} : vector<8x128xf32> to vector<1x128xf32>
    %7 = vector.extract_strided_slice %4 {offsets = [2, 0], sizes = [1, 128], strides = [1, 1]} : vector<8x128xf32> to vector<1x128xf32>
    %cst = arith.constant dense<0.000000e+00> : vector<8x128xf32>
    %8 = tpu.matmul %0, %1, %cst {dimension_numbers = #tpu.dot_dimension_numbers<[1], [0], [0], [1], [0, 0, 1, 1], [], []>} : vector<8x16xf32>, vector<16x128xf32>, vector<8x128xf32> -> vector<8x128xf32>
    %9 = vector.broadcast %5 : vector<1x128xf32> to vector<8x128xf32>
    %10 = arith.addf %8, %9 : vector<8x128xf32>
    %cst_6 = arith.constant 0.000000e+00 : f32
    %11 = vector.broadcast %cst_6 : f32 to vector<8x128xf32>
    %12 = arith.cmpf ogt, %10, %11 : vector<8x128xf32>
    %cst_7 = arith.constant 0.00999999977 : f32
    %13 = vector.broadcast %cst_7 : f32 to vector<8x128xf32>
    %14 = arith.mulf %13, %10 : vector<8x128xf32>
    %15 = arith.select %12, %10, %14 : vector<8x128xi1>, vector<8x128xf32>
    %cst_8 = arith.constant dense<0.000000e+00> : vector<8x128xf32>
    %16 = tpu.matmul %15, %2, %cst_8 {dimension_numbers = #tpu.dot_dimension_numbers<[1], [0], [0], [1], [0, 0, 1, 1], [], []>} : vector<8x128xf32>, vector<128x128xf32>, vector<8x128xf32> -> vector<8x128xf32>
    %17 = vector.broadcast %6 : vector<1x128xf32> to vector<8x128xf32>
    %18 = arith.addf %16, %17 : vector<8x128xf32>
    %cst_9 = arith.constant 0.000000e+00 : f32
    %19 = vector.broadcast %cst_9 : f32 to vector<8x128xf32>
    %20 = arith.cmpf ogt, %18, %19 : vector<8x128xf32>
    %cst_10 = arith.constant 0.00999999977 : f32
    %21 = vector.broadcast %cst_10 : f32 to vector<8x128xf32>
    %22 = arith.mulf %21, %18 : vector<8x128xf32>
    %23 = arith.select %20, %18, %22 : vector<8x128xi1>, vector<8x128xf32>
    %cst_11 = arith.constant dense<0.000000e+00> : vector<8x128xf32>
    %24 = tpu.matmul %23, %3, %cst_11 {dimension_numbers = #tpu.dot_dimension_numbers<[1], [0], [0], [1], [0, 0, 1, 1], [], []>} : vector<8x128xf32>, vector<128x128xf32>, vector<8x128xf32> -> vector<8x128xf32>
    %25 = vector.broadcast %7 : vector<1x128xf32> to vector<8x128xf32>
    %26 = arith.addf %24, %25 : vector<8x128xf32>
    %27 = math.tanh %26 : vector<8x128xf32>
    %c0_12 = arith.constant 0 : index
    %c0_13 = arith.constant 0 : index
    %28 = vector.load %arg3[%c0_12, %c0_13] : memref<8x128xf32, #tpu.memory_space<vmem>>, vector<8x128xf32>
    %cst_14 = arith.constant 2.000000e+00 : f32
    %29 = vector.broadcast %cst_14 : f32 to vector<8x128xf32>
    %30 = arith.mulf %29, %28 : vector<8x128xf32>
    %cst_15 = arith.constant 1.000000e+00 : f32
    %31 = vector.broadcast %cst_15 : f32 to vector<8x128xf32>
    %32 = arith.subf %30, %31 : vector<8x128xf32>
    %cst_16 = arith.constant 1.000000e-01 : f32
    %33 = vector.broadcast %cst_16 : f32 to vector<8x128xf32>
    %34 = arith.mulf %32, %33 : vector<8x128xf32>
    %35 = arith.addf %27, %34 : vector<8x128xf32>
    %36 = tpu.concatenate %27, %35 in 1 : vector<8x128xf32>, vector<8x128xf32> -> vector<8x256xf32>
    %c0_17 = arith.constant 0 : index
    %c0_18 = arith.constant 0 : index
    %37 = vector.load %arg4[%c0_17, %c0_18] : memref<8x256xf32, #tpu.memory_space<vmem>>, vector<8x256xf32>
    tpu.vector_store %arg4[%c0_17, %c0_18], %36 {strides = array<i32>} : memref<8x256xf32, #tpu.memory_space<vmem>>, vector<8x256xf32>,
    return
  }
  func.func @transform_0(%arg0: i32) -> (i32, i32) {
    %c0_i32 = arith.constant 0 : i32
    %c0_i32_0 = arith.constant 0 : i32
    return %arg0, %c0_i32 : i32, i32
  }
  func.func @transform_1(%arg0: i32) -> (i32, i32) {
    %c0_i32 = arith.constant 0 : i32
    %c0_i32_0 = arith.constant 0 : i32
    %c0_i32_1 = arith.constant 0 : i32
    return %c0_i32, %c0_i32_0 : i32, i32
  }
  func.func @transform_2(%arg0: i32) -> (i32, i32) {
    %c0_i32 = arith.constant 0 : i32
    %c0_i32_0 = arith.constant 0 : i32
    return %arg0, %c0_i32 : i32, i32
  }
  func.func @transform_3(%arg0: i32) -> (i32, i32) {
    %c0_i32 = arith.constant 0 : i32
    %c0_i32_0 = arith.constant 0 : i32
    return %arg0, %c0_i32 : i32, i32
  }
}

</mosaic_0001>

<bundles_post_ra>
// kernel: tpu_custom_call.1
= control target key start
LH: loop header
LB: loop body
LE: loop exit
PB: predicated region body
PF: predicated region fallthrough
CT: control target
= control target key end

     0   :  { %8 = vsyncpa [#allocation3], 0  ;;  %s636_s0 = inlined_call_operand.hbm [shape: f32[8,16], index: 0, kind: input, shape index: {}]   ;;  %s637_s1 = inlined_call_operand.hbm [shape: f32[280,128], index: 1, kind: input, shape index: {}]   ;;  %s638_s2 = inlined_call_operand.hbm [shape: f32[8,128], index: 2, kind: input, shape index: {}]   ;;  %s639_s3 = inlined_call_operand.hbm [shape: f32[8,256], index: 3, kind: output, shape index: {}]  }
   0x1   :  { %9 = vsyncpa [#allocation6], 0 }
   0x2   :  { %10 = vsyncpa [#allocation4], 0  ;;  %s556_s12 = smov [#allocation5]  }
   0x3   :  { %s26_s13 = sshll.u32 %s556_s12, 4  ;;  %s27_s13 = int_to_ptr.vmem [resolvable:$true] %s26_s13 }
   0x4   :  { %s478_s14 = scalar_lea.vmem %s27_s13, 4480  ;;  %p483_p1 = scmp.lt.s32.totalorder %s27_s13, %s27_s13 }
   0x5   :  { %p479_p0 = scmp.ne.s32.totalorder %s27_s13, %s478_s14  ;;  %p484_p2 = scmp.lt.s32.totalorder %s478_s14, %s478_s14 }
   0x7   :  { %p485_p3 = por %p484_p2, %p483_p1 }
   0x9   :  { %p486_p4 = pnand %p485_p3, %p479_p0 }
   0xb   :  { %489 = shalt.err (!%p486_p4)
}
   0xc   :  { %s557_s15 = smov 128   ;;  %s558_s16 = smov 8  }
   0xd   :  { %32 = dma.hbm_to_vmem [thread:$0]  %s637_s1, 4480, %s27_s13, [#allocation6], %s557_s15, %s557_s15, %s558_s16  }
   0xe   :  { %s559_s19 = smov [#allocation2]   ;;  %s560_s21 = smov [#allocation7]  }
   0xf   :  { %s17_s20 = sshll.u32 %s559_s19, 4  ;;  %s39_s22 = sshll.u32 %s560_s21, 4  ;;  %s18_s20 = int_to_ptr.vmem [resolvable:$true] %s17_s20  ;;  %s40_s22 = int_to_ptr.vmem [resolvable:$true] %s39_s22 }
  0x10   :  { %s498_s23 = scalar_lea.vmem %s18_s20, 128  ;;  %p503_p6 = scmp.lt.s32.totalorder %s18_s20, %s18_s20 }
  0x11   :  { %p499_p5 = scmp.ne.s32.totalorder %s18_s20, %s498_s23  ;;  %p504_p7 = scmp.lt.s32.totalorder %s498_s23, %s498_s23 }
  0x13   :  { %p505_p8 = por %p504_p7, %p503_p6 }
  0x15   :  { %p506_p9 = pnand %p505_p8, %p499_p5 }
  0x17   :  { %509 = shalt.err (!%p506_p9)
}
  0x18   :  { %20 = dma.hbm_to_vmem [thread:$0]  %s636_s0, 128, %s18_s20, [#allocation3]  }
  0x19   :  { %s518_s26 = scalar_lea.vmem %s40_s22, 128  ;;  %p523_p11 = scmp.lt.s32.totalorder %s40_s22, %s40_s22 }
  0x1a   :  { %p519_p10 = scmp.ne.s32.totalorder %s40_s22, %s518_s26  ;;  %p524_p12 = scmp.lt.s32.totalorder %s518_s26, %s518_s26 }
  0x1c   :  { %p525_p13 = por %p524_p12, %p523_p11 }
  0x1e   :  { %p526_p0 = pnand %p525_p13, %p519_p10 }
  0x20   :  { %529 = shalt.err (!%p526_p0)
}
  0x21   :  { %42 = dma.hbm_to_vmem [thread:$0]  %s638_s2, 128, %s40_s22, [#allocation6]  }
  0x22   :  { %550 = dma.done.wait [#allocation3], 128  }
  0x23   :  { %551 = vsyncadd [#allocation3], 4294967168 }
  0x24   :  { %552 = dma.done.wait [#allocation6], 4608  }
  0x25   :  { %553 = vsyncadd [#allocation6], 4294962688  ;;  %v561_v0 = vmov 0.0   ;;  %vm562_vm0 = vmmov 0   ;;  %v54_v1 = vld [vmem:[#allocation5 + $0x8] sm:$0xff]  ;;  %v53_v2 = vld [vmem:[#allocation5] sm:$0xff]  ;;  %v88_v33 = vlaneseq }
  0x26   :  { %383 = vmatprep.subr.mxu0 %v561_v0  ;;  %387 = vmatprep.mubr.msk.f32.mxu0 %vm562_vm0, %v561_v0  ;;  %v52_v3 = vld [vmem:[#allocation2] sm:$0xff]  ;;  %vm92_vm1 = vcmask 130048   ;;  %v70_v4 = vld [vmem:[#allocation5 + $0x88] sm:$0xff]  ;;  %v69_v5 = vld [vmem:[#allocation5 + $0x80] sm:$0xff]  ;;  %s563_s0 = smov [#allocation8]  }
  0x27   :  { %390 = vmatprep.subr.mxu1 %v561_v0  ;;  %422 = vmatprep.mubr.msk.f32.mxu1 %vm562_vm0, %v561_v0  ;;  %v68_v6 = vld [vmem:[#allocation5 + $0x78] sm:$0xff]  ;;  %v67_v7 = vld [vmem:[#allocation5 + $0x70] sm:$0xff]  ;;  %v66_v8 = vld [vmem:[#allocation5 + $0x68] sm:$0xff]  ;;  %v89_v34 = vshrl.u32 %v88_v33, 7  ;;  %s334_s2 = sshll.u32 %s563_s0, 4  ;;  %s335_s2 = int_to_ptr.vmem [resolvable:$true] %s334_s2 }
  0x28   :  { %384 = vmatpush3.msra.mxu0 %v54_v1  ;;  %391 = vmatpush3.msra.mxu1 %v70_v4  ;;  %v65_v9 = vld [vmem:[#allocation5 + $0x60] sm:$0xff]  ;;  %v64_v10 = vld [vmem:[#allocation5 + $0x58] sm:$0xff]  ;;  %v63_v11 = vld [vmem:[#allocation5 + $0x50] sm:$0xff]  ;;  %s530_s28 = scalar_lea.vmem %s335_s2, 256  ;;  %p535_p2 = scmp.lt.s32.totalorder %s335_s2, %s335_s2 }
  0x29   :  { %385 = vmatprep.subr.mxu0 %v561_v0  ;;  %392 = vmatprep.subr.mxu1 %v561_v0  ;;  %v62_v12 = vld [vmem:[#allocation5 + $0x48] sm:$0xff]  ;;  %v61_v13 = vld [vmem:[#allocation5 + $0x40] sm:$0xff]  ;;  %v60_v14 = vld [vmem:[#allocation5 + $0x38] sm:$0xff]  ;;  %v90_v35 = vsub.s32 0, %v89_v34  ;;  %v171_v46 = vsub.s32 1, %v89_v34  ;;  %v248_v53 = vsub.s32 2, %v89_v34  ;;  %p531_p1 = scmp.ne.s32.totalorder %s335_s2, %s530_s28  ;;  %p536_p3 = scmp.lt.s32.totalorder %s530_s28, %s530_s28 }
  0x2a   :  { %386 = vmatpush3.msra.mxu0 %v53_v2  ;;  %393 = vmatpush3.msra.mxu1 %v69_v5  ;;  %v59_v15 = vld [vmem:[#allocation5 + $0x30] sm:$0xff]  ;;  %v58_v16 = vld [vmem:[#allocation5 + $0x28] sm:$0xff]  ;;  %v57_v17 = vld [vmem:[#allocation5 + $0x20] sm:$0xff] }
  0x2b   :  { %388 = vmatmul.mubr.msk.f32.vlgmr.msra.gmra.mxu0 %vm92_vm1, %v52_v3  ;;  %394 = vmatprep.subr.mxu1 %v561_v0  ;;  %v56_v18 = vld [vmem:[#allocation5 + $0x18] sm:$0xff]  ;;  %v55_v19 = vld [vmem:[#allocation5 + $0x10] sm:$0xff]  ;;  %v86_v20 = vld [vmem:[#allocation5 + $0x108] sm:$0xff]  ;;  %p537_p4 = por %p536_p3, %p535_p2 }
  0x2c   :  { %425 = vmatprep.subr.mxu0 %v561_v0  ;;  %395 = vmatpush3.msra.mxu1 %v68_v6  ;;  %v85_v21 = vld [vmem:[#allocation5 + $0x100] sm:$0xff]  ;;  %v84_v22 = vld [vmem:[#allocation5 + $0xf8] sm:$0xff]  ;;  %v83_v23 = vld [vmem:[#allocation5 + $0xf0] sm:$0xff] }
  0x2d   :  { %457 = vmatprep.mubr.msk.f32.mxu0 %vm562_vm0, %v561_v0  ;;  %396 = vmatprep.subr.mxu1 %v561_v0  ;;  %v82_v24 = vld [vmem:[#allocation5 + $0xe8] sm:$0xff]  ;;  %v81_v25 = vld [vmem:[#allocation5 + $0xe0] sm:$0xff]  ;;  %v80_v26 = vld [vmem:[#allocation5 + $0xd8] sm:$0xff]  ;;  %p538_p5 = pnand %p537_p4, %p531_p1 }
  0x2e   :  { %397 = vmatpush3.msra.mxu1 %v67_v7  ;;  %426 = vmatpush3.msra.mxu0 %v86_v20  ;;  %v79_v27 = vld [vmem:[#allocation5 + $0xd0] sm:$0xff]  ;;  %v78_v28 = vld [vmem:[#allocation5 + $0xc8] sm:$0xff]  ;;  %v77_v29 = vld [vmem:[#allocation5 + $0xc0] sm:$0xff] }
  0x2f   :  { %398 = vmatprep.subr.mxu1 %v561_v0  ;;  %427 = vmatprep.subr.mxu0 %v561_v0  ;;  %v76_v30 = vld [vmem:[#allocation5 + $0xb8] sm:$0xff]  ;;  %v75_v31 = vld [vmem:[#allocation5 + $0xb0] sm:$0xff]  ;;  %v74_v32 = vld [vmem:[#allocation5 + $0xa8] sm:$0xff] }
  0x30   :  { %399 = vmatpush3.msra.mxu1 %v66_v8  ;;  %428 = vmatpush3.msra.mxu0 %v85_v21  ;;  %v87_v36 = vld [vmem:[#allocation5 + $0x110] sm:$0xff]  ;;  %v73_v43 = vld [vmem:[#allocation5 + $0xa0] sm:$0xff]  ;;  %v72_v44 = vld [vmem:[#allocation5 + $0x98] sm:$0xff] }
  0x31   :  { %400 = vmatprep.subr.mxu1 %v561_v0  ;;  %429 = vmatprep.subr.mxu0 %v561_v0  ;;  %v91_v37 = vrot.slane %v87_v36, %v90_v35  ;;  %v71_v45 = vld [vmem:[#allocation5 + $0x90] sm:$0xff]  ;;  %v172_v47 = vrot.slane %v87_v36, %v171_v46  ;;  %v249_v54 = vrot.slane %v87_v36, %v248_v53  ;;  %v321_v58 = vld [vmem:[#allocation7] sm:$0xff] }
  0x32   :  { %401 = vmatpush3.msra.mxu1 %v65_v9  ;;  %430 = vmatpush3.msra.mxu0 %v84_v22  ;;  %v322_v59 = vmul.f32 2.0, %v321_v58 }
  0x33   :  { %402 = vmatprep.subr.mxu1 %v561_v0  ;;  %431 = vmatprep.subr.mxu0 %v561_v0 }
  0x34   :  { %403 = vmatpush3.msra.mxu1 %v64_v10  ;;  %432 = vmatpush3.msra.mxu0 %v83_v23  ;;  %v345_v60 = vadd.f32 -1.0, %v322_v59 }
  0x35   :  { %404 = vmatprep.subr.mxu1 %v561_v0  ;;  %433 = vmatprep.subr.mxu0 %v561_v0 }
  0x36   :  { %405 = vmatpush3.msra.mxu1 %v63_v11  ;;  %434 = vmatpush3.msra.mxu0 %v82_v24  ;;  %v324_v61 = vmul.f32 0.1, %v345_v60 }
  0x37   :  { %406 = vmatprep.subr.mxu1 %v561_v0  ;;  %435 = vmatprep.subr.mxu0 %v561_v0 }
  0x38   :  { %407 = vmatpush3.msra.mxu1 %v62_v12  ;;  %436 = vmatpush3.msra.mxu0 %v81_v25 }
  0x39   :  { %408 = vmatprep.subr.mxu1 %v561_v0  ;;  %437 = vmatprep.subr.mxu0 %v561_v0 }
  0x3a   :  { %409 = vmatpush3.msra.mxu1 %v61_v13  ;;  %438 = vmatpush3.msra.mxu0 %v80_v26 }
  0x3b   :  { %410 = vmatprep.subr.mxu1 %v561_v0  ;;  %439 = vmatprep.subr.mxu0 %v561_v0 }
  0x3c   :  { %411 = vmatpush3.msra.mxu1 %v60_v14  ;;  %440 = vmatpush3.msra.mxu0 %v79_v27 }
  0x3d   :  { %412 = vmatprep.subr.mxu1 %v561_v0  ;;  %441 = vmatprep.subr.mxu0 %v561_v0 }
  0x3e   :  { %413 = vmatpush3.msra.mxu1 %v59_v15  ;;  %442 = vmatpush3.msra.mxu0 %v78_v28 }
  0x3f   :  { %414 = vmatprep.subr.mxu1 %v561_v0  ;;  %443 = vmatprep.subr.mxu0 %v561_v0 }
  0x40   :  { %415 = vmatpush3.msra.mxu1 %v58_v16  ;;  %444 = vmatpush3.msra.mxu0 %v77_v29 }
  0x41   :  { %416 = vmatprep.subr.mxu1 %v561_v0  ;;  %445 = vmatprep.subr.mxu0 %v561_v0 }
  0x42   :  { %417 = vmatpush3.msra.mxu1 %v57_v17  ;;  %446 = vmatpush3.msra.mxu0 %v76_v30 }
  0x43   :  { %418 = vmatprep.subr.mxu1 %v561_v0  ;;  %447 = vmatprep.subr.mxu0 %v561_v0 }
  0x44   :  { %419 = vmatpush3.msra.mxu1 %v56_v18  ;;  %448 = vmatpush3.msra.mxu0 %v75_v31 }
  0x45   :  { %420 = vmatprep.subr.mxu1 %v561_v0  ;;  %449 = vmatprep.subr.mxu0 %v561_v0 }
  0x46   :  { %421 = vmatpush3.msra.mxu1 %v55_v19  ;;  %450 = vmatpush3.msra.mxu0 %v74_v32 }
  0x47   :  { %451 = vmatprep.subr.mxu0 %v561_v0 }
  0x48   :  { %452 = vmatpush3.msra.mxu0 %v73_v43 }
  0x49   :  { %453 = vmatprep.subr.mxu0 %v561_v0 }
  0x4a   :  { %454 = vmatpush3.msra.mxu0 %v72_v44 }
  0x4b   :  { %455 = vmatprep.subr.mxu0 %v561_v0 }
  0x4c   :  { %456 = vmatpush3.msra.mxu0 %v71_v45 }
  0xeb   :  { %v162_v38 = vpop.f32.mrf.mxu0 }
  0xec   :  { %v163_v39 = vadd.f32 %v162_v38, %v91_v37 }
  0xed   :  { %v389_v40 = vpop.f32.mrf.mxu0 }
  0xee   :  { %v167_v41 = vmul.f32 0.01, %v163_v39  ;;  %vm166_vm2 = vcmp.gt.f32.partialorder %v163_v39, 0.0 }
  0xf0   :  { %v168_v42 = vsel %vm166_vm2, %v163_v39, %v167_v41 }
  0xf1   :  { %423 = vmatmul.mubr.f32.vlgmr.msra.gmra.mxu1 %v168_v42 }
 0x1b1   :  { %v239_v48 = vpop.f32.mrf.mxu1 }
 0x1b2   :  { %v240_v49 = vadd.f32 %v239_v48, %v172_v47 }
 0x1b3   :  { %v424_v50 = vpop.f32.mrf.mxu1 }
 0x1b4   :  { %vm243_vm3 = vcmp.gt.f32.partialorder %v240_v49, 0.0  ;;  %v244_v51 = vmul.f32 0.01, %v240_v49 }
 0x1b6   :  { %v245_v52 = vsel %vm243_vm3, %v240_v49, %v244_v51 }
 0x1b7   :  { %458 = vmatmul.mubr.f32.vlgmr.msra.gmra.mxu0 %v245_v52 }
 0x277   :  { %v316_v55 = vpop.f32.mrf.mxu0 }
 0x278   :  { %v317_v56 = vadd.f32 %v316_v55, %v249_v54 }
 0x279   :  { %v459_v57 = vpop.f32.mrf.mxu0 }
 0x27a   :  { %468 = vtanh.f32 %v317_v56 }
 0x287   :  { %v469_v62 = vpop.eup %468 }
 0x288   :  { %326 = vst [vmem:[#allocation8] sm:$0xff] %v469_v62  ;;  %v325_v63 = vadd.f32 %v469_v62, %v324_v61 }
 0x28a   :  { %327 = vst [vmem:[#allocation8 + $0x8] sm:$0xff] %v325_v63 }
 0x28b   :  { %541 = shalt.err (!%p538_p5)
}
 0x28c   :  { %337 = dma.vmem_to_hbm [thread:$0]  %s335_s2, 256, %s639_s3, [#allocation4]  }
 0x28d   :  { %554 = dma.done.wait [#allocation4], 256  }
 0x28e   :  { %555 = vsyncadd [#allocation4], 4294967040 }
 0x28f   :  { %341 = vsyncpa [#allocation3], 1 }
 0x290   :  { %342 = vsyncpa [#allocation6], 1 }
 0x291   :  { %343 = vsyncpa [#allocation4], 1 }

</bundles_post_ra>
